<compile_context>
chip_gen: v5e
topology: v5e:2x2
jax: 0.10.0
libtpu: 0.0.40
codegen_flags: <defaults>
</compile_context>

<pallas_src>
import math

import jax
import jax.numpy as jnp
import numpy as np
from jax.experimental import pallas as pl
from jax.experimental.pallas import tpu as pltpu


def _round_up(x, m):
    return (x + m - 1) // m * m


def _down_conv_bn_silu_kernel(x_ref, w_ref, b_ref, o_ref):
    # x_ref : (tb, k, Wo, k*C)  bf16 activation rows (k input lines per output line)
    # w_ref : (k, k*C, tn)      bf16 weights with BN scale folded in; one slab per conv row
    # b_ref : (1, tn)           f32 folded-BN bias
    # o_ref : (tb*Wo, tn)       output tile (lane-dense)
    tb, k, wo, kc = x_ref.shape
    tm, tn = o_ref.shape
    acc = None
    for kh in range(k):                                          # k == 2, static unroll
        a = x_ref[:, kh, :, :].reshape(tm, kc)                   # (tb*Wo, k*C)
        d = jnp.dot(a, w_ref[kh], preferred_element_type=jnp.float32)
        acc = d if acc is None else acc + d
    y = acc + b_ref[...]                                         # folded BatchNorm (eval)
    o_ref[...] = (y * jax.nn.sigmoid(y)).astype(o_ref.dtype)     # SiLU


def downsample_pallas(x_nchw, weight, gamma, beta, running_mean, running_var,
                      eps=1e-3, scale_factor=2, *, tm_rows=1024, tn=128,
                      compute_dtype=jnp.bfloat16):
    N, C, H, W = x_nchw.shape
    k = scale_factor
    assert H % k == 0 and W % k == 0, "stride-2 downsample expects even H, W"
    Ho, Wo = H // k, W // k
    Cout = weight.shape[0]
    out_dtype = x_nchw.dtype

    # --- single pass over x: bf16 cast fuses into the NCHW->NHWC transpose ----------
    # TODO(synk): if the surrounding model is kept NHWC end-to-end, this transpose and
    # the final output transpose disappear entirely.
    x = jnp.transpose(x_nchw.astype(compute_dtype), (0, 2, 3, 1))       # (N, H, W, C)
    # Free (layout-preserving) reshape: last axis is ordered (kw, c) -- exactly one
    # conv-row slice of a 2x2 patch.
    xr = x.reshape(N * Ho, k, Wo, k * C)

    # Fold BatchNorm (eval semantics, track_running_stats) into the weights (f32).
    inv_std = 1.0 / jnp.sqrt(running_var.astype(jnp.float32) + eps)
    bn_scale = gamma.astype(jnp.float32) * inv_std                       # (Cout,)
    bn_bias = beta.astype(jnp.float32) - running_mean.astype(jnp.float32) * bn_scale

    # PyTorch conv weight (Cout, Cin, kh, kw) -> (kh, (kw, Cin), Cout), scale folded in.
    w = jnp.transpose(weight.astype(jnp.float32), (2, 3, 1, 0)).reshape(k, k * C, Cout)
    w = (w * bn_scale[None, None, :]).astype(compute_dtype)
    bias = bn_bias.reshape(1, Cout)                                      # (1, Cout) f32

    # --- pad Cout up to a lane-dense multiple of tn (zero cols, cropped afterwards) --
    Cp = _round_up(Cout, tn)
    if Cp != Cout:
        w = jnp.pad(w, ((0, 0), (0, 0), (0, Cp - Cout)))
        bias = jnp.pad(bias, ((0, 0), (0, Cp - Cout)))

    # --- row block: tb rows of (N*Ho), i.e. tm = tb*Wo output pixels per tile --------
    rows = N * Ho
    g = 8 // math.gcd(Wo, 8)                 # tb multiple of g  =>  tb*Wo multiple of 8
    act_row_bytes = k * Wo * k * C * jnp.dtype(compute_dtype).itemsize
    tb_target = max(1, tm_rows // Wo)
    tb_cap = max(1, (4 * 1024 * 1024) // act_row_bytes)   # <= ~4 MiB activation / step
    tb = max(g, _round_up(min(tb_target, tb_cap), g))
    tb = min(tb, _round_up(rows, g))         # never bigger than the (padded) problem
    rows_p = _round_up(rows, tb)
    if rows_p != rows:
        xr = jnp.pad(xr, ((0, rows_p - rows), (0, 0), (0, 0), (0, 0)))

    M, Mp = rows * Wo, rows_p * Wo
    grid = (rows_p // tb, Cp // tn)

    # TODO(synk): for very large Cin (K = 4*Cin), add a trailing "arbitrary" K grid axis
    # with a VMEM accumulator so the weight tile stays bounded on v7x's smaller VMEM.
    out = pl.pallas_call(
        _down_conv_bn_silu_kernel,
        out_shape=jax.ShapeDtypeStruct((Mp, Cp), out_dtype),
        grid_spec=pltpu.PrefetchScalarGridSpec(
            num_scalar_prefetch=0,
            grid=grid,
            in_specs=[
                pl.BlockSpec((tb, k, Wo, k * C), lambda i, j: (i, 0, 0, 0)),
                pl.BlockSpec((k, k * C, tn), lambda i, j: (0, 0, j)),
                pl.BlockSpec((1, tn), lambda i, j: (0, j)),
            ],
            out_specs=pl.BlockSpec((tb * Wo, tn), lambda i, j: (i, j)),
        ),
        compiler_params=pltpu.CompilerParams(
            dimension_semantics=("parallel", "parallel"),
            vmem_limit_bytes=32 * 1024 * 1024,
        ),
        cost_estimate=pl.CostEstimate(
            flops=2 * Mp * (k * k * C) * Cp,
            transcendentals=Mp * Cp,
            bytes_accessed=(xr.size * xr.dtype.itemsize
                            + w.size * w.dtype.itemsize
                            + bias.size * bias.dtype.itemsize
                            + Mp * Cp * jnp.dtype(out_dtype).itemsize),
        ),
    )(xr, w, bias)

    # Crop padding, restore NCHW to match the PyTorch module's output layout.
    out = out[:M, :Cout].reshape(N, Ho, Wo, Cout)
    return jnp.transpose(out, (0, 3, 1, 2))


def _reference(x_nchw, weight, gamma, beta, running_mean, running_var, eps=1e-3, k=2):
    y = jax.lax.conv_general_dilated(
        x_nchw, weight, window_strides=(k, k), padding="VALID",
        dimension_numbers=("NCHW", "OIHW", "NCHW"))
    inv_std = 1.0 / jnp.sqrt(running_var + eps)
    scale = (gamma * inv_std)[None, :, None, None]
    bias = (beta - running_mean * gamma * inv_std)[None, :, None, None]
    y = y * scale + bias
    return y * jax.nn.sigmoid(y)


if __name__ == "__main__":
    key = jax.random.PRNGKey(0)
    k_x, k_w, k_g, k_b, k_m, k_v = jax.random.split(key, 6)

    N, Cin, H, W = 2, 4, 16, 16
    Cout, kk = 8, 2  # scale_factor = 2

    x = jax.random.normal(k_x, (N, Cin, H, W), dtype=jnp.float32)
    weight = jax.random.normal(k_w, (Cout, Cin, kk, kk), dtype=jnp.float32) * 0.1
    gamma = 1.0 + 0.1 * jax.random.normal(k_g, (Cout,), dtype=jnp.float32)
    beta = 0.1 * jax.random.normal(k_b, (Cout,), dtype=jnp.float32)
    running_mean = 0.05 * jax.random.normal(k_m, (Cout,), dtype=jnp.float32)
    running_var = jnp.abs(1.0 + 0.1 * jax.random.normal(k_v, (Cout,), dtype=jnp.float32))

    out = downsample_pallas(x, weight, gamma, beta, running_mean, running_var)
    out = jax.block_until_ready(out)

    ref = _reference(x, weight, gamma, beta, running_mean, running_var)
    assert out.shape == (N, Cout, H // 2, W // 2), out.shape
    # bf16-streamed operands with f32 accumulation vs. a pure-f32 reference:
    # loosened (but still tight for bf16) tolerance.
    np.testing.assert_allclose(np.asarray(out), np.asarray(ref), rtol=2e-2, atol=2e-2)

    print("KERNEL_OK")
</pallas_src>

<mosaic_0001>
module attributes {stable_mosaic.version = 11 : i64} {
  func.func @_down_conv_bn_silu_kernel(%arg0: i32, %arg1: i32, %arg2: memref<16x2x8x8xbf16, #tpu.memory_space<vmem>>, %arg3: memref<2x8x128xbf16, #tpu.memory_space<vmem>>, %arg4: memref<1x128xf32, #tpu.memory_space<vmem>>, %arg5: memref<128x128xf32, #tpu.memory_space<vmem>>) attributes {dimension_semantics = [#tpu.dimension_semantics<parallel>, #tpu.dimension_semantics<parallel>], iteration_bounds = array<i64: 1, 1>, scalar_prefetch = 0 : i64, scratch_operands = 0 : i64, tpu.core_type = #tpu.core_type<tc>, window_params = [{transform_indices = @transform_0, window_bounds = array<i64: 16, 2, 8, 8>}, {transform_indices = @transform_1, window_bounds = array<i64: 2, 8, 128>}, {transform_indices = @transform_2, window_bounds = array<i64: 1, 128>}, {transform_indices = @transform_3, window_bounds = array<i64: 128, 128>}]} {
    %c0 = arith.constant 0 : index
    %c0_0 = arith.constant 0 : index
    %c0_1 = arith.constant 0 : index
    %c0_2 = arith.constant 0 : index
    %0 = vector.load %arg2[%c0, %c0_0, %c0_1, %c0_2] : memref<16x2x8x8xbf16, #tpu.memory_space<vmem>>, vector<16x1x8x8xbf16>
    %1 = vector.shape_cast %0 : vector<16x1x8x8xbf16> to vector<16x8x8xbf16>
    %2 = vector.shape_cast %1 : vector<16x8x8xbf16> to vector<128x8xbf16>
    %c0_3 = arith.constant 0 : index
    %c0_4 = arith.constant 0 : index
    %c0_5 = arith.constant 0 : index
    %3 = vector.load %arg3[%c0_3, %c0_4, %c0_5] : memref<2x8x128xbf16, #tpu.memory_space<vmem>>, vector<1x8x128xbf16>
    %4 = vector.shape_cast %3 : vector<1x8x128xbf16> to vector<8x128xbf16>
    %cst = arith.constant dense<0.000000e+00> : vector<128x128xf32>
    %5 = tpu.matmul %2, %4, %cst {dimension_numbers = #tpu.dot_dimension_numbers<[1], [0], [0], [1], [0, 0, 1, 1], [], []>} : vector<128x8xbf16>, vector<8x128xbf16>, vector<128x128xf32> -> vector<128x128xf32>
    %c0_6 = arith.constant 0 : index
    %c1 = arith.constant 1 : index
    %c0_7 = arith.constant 0 : index
    %c0_8 = arith.constant 0 : index
    %6 = vector.load %arg2[%c0_6, %c1, %c0_7, %c0_8] : memref<16x2x8x8xbf16, #tpu.memory_space<vmem>>, vector<16x1x8x8xbf16>
    %7 = vector.shape_cast %6 : vector<16x1x8x8xbf16> to vector<16x8x8xbf16>
    %8 = vector.shape_cast %7 : vector<16x8x8xbf16> to vector<128x8xbf16>
    %c1_9 = arith.constant 1 : index
    %c0_10 = arith.constant 0 : index
    %c0_11 = arith.constant 0 : index
    %9 = vector.load %arg3[%c1_9, %c0_10, %c0_11] : memref<2x8x128xbf16, #tpu.memory_space<vmem>>, vector<1x8x128xbf16>
    %10 = vector.shape_cast %9 : vector<1x8x128xbf16> to vector<8x128xbf16>
    %cst_12 = arith.constant dense<0.000000e+00> : vector<128x128xf32>
    %11 = tpu.matmul %8, %10, %cst_12 {dimension_numbers = #tpu.dot_dimension_numbers<[1], [0], [0], [1], [0, 0, 1, 1], [], []>} : vector<128x8xbf16>, vector<8x128xbf16>, vector<128x128xf32> -> vector<128x128xf32>
    %12 = arith.addf %5, %11 : vector<128x128xf32>
    %c0_13 = arith.constant 0 : index
    %c0_14 = arith.constant 0 : index
    %13 = vector.load %arg4[%c0_13, %c0_14] : memref<1x128xf32, #tpu.memory_space<vmem>>, vector<1x128xf32>
    %14 = vector.broadcast %13 : vector<1x128xf32> to vector<128x128xf32>
    %15 = arith.addf %12, %14 : vector<128x128xf32>
    %16 = arith.negf %15 : vector<128x128xf32>
    %17 = math.exp %16 : vector<128x128xf32>
    %cst_15 = arith.constant 1.000000e+00 : f32
    %18 = vector.broadcast %cst_15 : f32 to vector<128x128xf32>
    %19 = arith.addf %18, %17 : vector<128x128xf32>
    %20 = arith.divf %18, %19 : vector<128x128xf32>
    %21 = arith.mulf %15, %20 : vector<128x128xf32>
    %c0_16 = arith.constant 0 : index
    %c0_17 = arith.constant 0 : index
    %22 = vector.load %arg5[%c0_16, %c0_17] : memref<128x128xf32, #tpu.memory_space<vmem>>, vector<128x128xf32>
    tpu.vector_store %arg5[%c0_16, %c0_17], %21 {strides = array<i32>} : memref<128x128xf32, #tpu.memory_space<vmem>>, vector<128x128xf32>,
    return
  }
  func.func @transform_0(%arg0: i32, %arg1: i32) -> (i32, i32, i32, i32) {
    %c0_i32 = arith.constant 0 : i32
    %c0_i32_0 = arith.constant 0 : i32
    %c0_i32_1 = arith.constant 0 : i32
    %c0_i32_2 = arith.constant 0 : i32
    return %arg0, %c0_i32, %c0_i32_0, %c0_i32_1 : i32, i32, i32, i32
  }
  func.func @transform_1(%arg0: i32, %arg1: i32) -> (i32, i32, i32) {
    %c0_i32 = arith.constant 0 : i32
    %c0_i32_0 = arith.constant 0 : i32
    %c0_i32_1 = arith.constant 0 : i32
    return %c0_i32, %c0_i32_0, %arg1 : i32, i32, i32
  }
  func.func @transform_2(%arg0: i32, %arg1: i32) -> (i32, i32) {
    %c0_i32 = arith.constant 0 : i32
    %c0_i32_0 = arith.constant 0 : i32
    return %c0_i32, %arg1 : i32, i32
  }
  func.func @transform_3(%arg0: i32, %arg1: i32) -> (i32, i32) {
    %c0_i32 = arith.constant 0 : i32
    return %arg0, %arg1 : i32, i32
  }
}

</mosaic_0001>

<bundles_post_ra>
// kernel: tpu_custom_call.1
= control target key start
LH: loop header
LB: loop body
LE: loop exit
PB: predicated region body
PF: predicated region fallthrough
CT: control target
= control target key end

     0   :  { %vm117_vm0 = vcmask 1043456   ;;  %vm92_vm1 = vcmask 64512   ;;  %s1246_s0 = inlined_call_operand.vmem [shape: bf16[16,2,8,8], index: 0, kind: input, shape index: {}]   ;;  %s1247_s1 = inlined_call_operand.vmem [shape: bf16[2,8,128], index: 1, kind: input, shape index: {}]   ;;  %s1248_s2 = inlined_call_operand.vmem [shape: f32[1,128], index: 2, kind: input, shape index: {}]   ;;  %s1249_s3 = inlined_call_operand.hbm [shape: f32[128,128], index: 3, kind: output, shape index: {}]  }
   0x1   :  { %v676_v0 = vld [vmem:[%s1247_s1 + $0x4] sm:$0xf]  ;;  %v32_v1 = vld [vmem:[%s1247_s1] sm:$0xf]  ;;  %v781_v5 = vld [vmem:[%s1246_s0 + $0x8] sm:$0xf0] }
   0x2   :  { %v119_v2 = vsel %vm117_vm0, %v676_v0, 0  ;;  %v235_v3 = vsel %vm117_vm0, %v32_v1, 0  ;;  %v679_v4 = vld [vmem:[%s1246_s0 + $0x4] sm:$0xf]  ;;  %v785_v8 = vld [vmem:[%s1246_s0 + $0x48] sm:$0xf0] }
   0x3   :  { %128 = vmatpush.bf16.msra.mxu0 %v119_v2  ;;  %789 = vmatpush.bf16.msra.mxu2 %v119_v2  ;;  %v680_v6 = vor.u32 %v781_v5, %v679_v4  ;;  %v695_v7 = vld [vmem:[%s1246_s0 + $0x44] sm:$0xf]  ;;  %v719_v9 = vld [vmem:[%s1246_s0] sm:$0xf]  ;;  %v773_v11 = vld [vmem:[%s1246_s0 + $0x4] sm:$0xf0] }
   0x4   :  { %244 = vmatpush.bf16.msra.mxu1 %v235_v3  ;;  %790 = vmatpush.bf16.msra.mxu3 %v235_v3  ;;  %v696_v10 = vor.u32 %v785_v8, %v695_v7  ;;  %v735_v12 = vld [vmem:[%s1246_s0 + $0x40] sm:$0xf]  ;;  %v777_v13 = vld [vmem:[%s1246_s0 + $0x44] sm:$0xf0]  ;;  %v720_v14 = vor.u32 %v773_v11, %v719_v9 }
   0x5   :  { %v736_v15 = vor.u32 %v777_v13, %v735_v12 }
   0x6   :  { %709 = vmatmul.msk.bf16.vlgmr.msra.gmra.mxu0 %vm92_vm1, %v680_v6  ;;  %713 = vmatmul.msk.bf16.vlgmr.msra.gmra.mxu2 %vm92_vm1, %v696_v10 }
   0x7   :  { %749 = vmatmul.msk.bf16.vlgmr.msra.gmra.mxu1 %vm92_vm1, %v720_v14  ;;  %753 = vmatmul.msk.bf16.vlgmr.msra.gmra.mxu3 %vm92_vm1, %v736_v15 }
   0x8   :  { %8 = vsyncpa [#allocation3], 0  ;;  %v683_v16 = vld [vmem:[%s1246_s0 + $0x14] sm:$0xf]  ;;  %v782_v17 = vld [vmem:[%s1246_s0 + $0x18] sm:$0xf0] }
   0x9   :  { %v699_v18 = vld [vmem:[%s1246_s0 + $0x54] sm:$0xf]  ;;  %v786_v19 = vld [vmem:[%s1246_s0 + $0x58] sm:$0xf0]  ;;  %v723_v20 = vld [vmem:[%s1246_s0 + $0x10] sm:$0xf]  ;;  %v684_v24 = vor.u32 %v782_v17, %v683_v16 }
   0xa   :  { %v774_v21 = vld [vmem:[%s1246_s0 + $0x14] sm:$0xf0]  ;;  %v739_v22 = vld [vmem:[%s1246_s0 + $0x50] sm:$0xf]  ;;  %v700_v25 = vor.u32 %v786_v19, %v699_v18  ;;  %v687_v28 = vld [vmem:[%s1246_s0 + $0x24] sm:$0xf] }
   0xb   :  { %v778_v23 = vld [vmem:[%s1246_s0 + $0x54] sm:$0xf0]  ;;  %v724_v26 = vor.u32 %v774_v21, %v723_v20  ;;  %v783_v29 = vld [vmem:[%s1246_s0 + $0x28] sm:$0xf0]  ;;  %v703_v30 = vld [vmem:[%s1246_s0 + $0x64] sm:$0xf] }
   0xc   :  { %v740_v27 = vor.u32 %v778_v23, %v739_v22  ;;  %v787_v31 = vld [vmem:[%s1246_s0 + $0x68] sm:$0xf0]  ;;  %v727_v32 = vld [vmem:[%s1246_s0 + $0x20] sm:$0xf]  ;;  %v775_v33 = vld [vmem:[%s1246_s0 + $0x24] sm:$0xf0]  ;;  %v688_v36 = vor.u32 %v783_v29, %v687_v28 }
   0xd   :  { %v743_v34 = vld [vmem:[%s1246_s0 + $0x60] sm:$0xf]  ;;  %v779_v35 = vld [vmem:[%s1246_s0 + $0x64] sm:$0xf0]  ;;  %v704_v37 = vor.u32 %v787_v31, %v703_v30  ;;  %v728_v38 = vor.u32 %v775_v33, %v727_v32  ;;  %v691_v40 = vld [vmem:[%s1246_s0 + $0x34] sm:$0xf] }
   0xe   :  { %v744_v39 = vor.u32 %v779_v35, %v743_v34  ;;  %v784_v41 = vld [vmem:[%s1246_s0 + $0x38] sm:$0xf0]  ;;  %v707_v42 = vld [vmem:[%s1246_s0 + $0x74] sm:$0xf]  ;;  %v731_v44 = vld [vmem:[%s1246_s0 + $0x30] sm:$0xf] }
   0xf   :  { %v788_v43 = vld [vmem:[%s1246_s0 + $0x78] sm:$0xf0]  ;;  %v776_v45 = vld [vmem:[%s1246_s0 + $0x34] sm:$0xf0]  ;;  %v747_v46 = vld [vmem:[%s1246_s0 + $0x70] sm:$0xf]  ;;  %v692_v48 = vor.u32 %v784_v41, %v691_v40 }
  0x10   :  { %v780_v47 = vld [vmem:[%s1246_s0 + $0x74] sm:$0xf0]  ;;  %v708_v49 = vor.u32 %v788_v43, %v707_v42  ;;  %v732_v50 = vor.u32 %v776_v45, %v731_v44  ;;  %v1029_v53 = vld [vmem:[%s1248_s2] ss:$0 sm:$0xff]  ;;  %s885_s0 = smov [#allocation2]   ;;  %s648_s27 = sshll.u32 %s1249_s3, 4  ;;  %s649_s27 = int_to_ptr.hbm [resolvable:$true] %s648_s27 }
  0x11   :  { %v748_v51 = vor.u32 %v780_v47, %v747_v46  ;;  %s646_s2 = sshll.u32 %s885_s0, 4  ;;  %s886_s28 = smov 128   ;;  %s647_s2 = int_to_ptr.vmem [resolvable:$true] %s646_s2 }
  0x12   :  { %s887_s29 = smov 8  }
  0x16   :  { %710 = vmatmul.msk.bf16.gmra.mxu0 %vm92_vm1, %v684_v24  ;;  %714 = vmatmul.msk.bf16.gmra.mxu2 %vm92_vm1, %v700_v25 }
  0x17   :  { %750 = vmatmul.msk.bf16.gmra.mxu1 %vm92_vm1, %v724_v26  ;;  %754 = vmatmul.msk.bf16.gmra.mxu3 %vm92_vm1, %v740_v27 }
  0x26   :  { %711 = vmatmul.msk.bf16.gmra.mxu0 %vm92_vm1, %v688_v36  ;;  %715 = vmatmul.msk.bf16.gmra.mxu2 %vm92_vm1, %v704_v37 }
  0x27   :  { %751 = vmatmul.msk.bf16.gmra.mxu1 %vm92_vm1, %v728_v38  ;;  %755 = vmatmul.msk.bf16.gmra.mxu3 %vm92_vm1, %v744_v39 }
  0x36   :  { %712 = vmatmul.msk.bf16.gmra.mxu0 %vm92_vm1, %v692_v48  ;;  %716 = vmatmul.msk.bf16.gmra.mxu2 %vm92_vm1, %v708_v49 }
  0x37   :  { %752 = vmatmul.msk.bf16.gmra.mxu1 %vm92_vm1, %v732_v50  ;;  %756 = vmatmul.msk.bf16.gmra.mxu3 %vm92_vm1, %v748_v51 }
  0x83   :  { %v130_v52 = vpop.f32.mrf.mxu0 }
  0x84   :  { %v246_v54 = vpop.f32.mrf.mxu1 }
  0x85   :  { %v247_v55 = vadd.f32 %v246_v54, %v130_v52 }
  0x87   :  { %v1032_v56 = vadd.f32 %v1029_v53, %v247_v55 }
  0x89   :  { %v757_v57 = vmul.f32 -1.442695, %v1032_v56  ;;  %v150_v58 = vpop.f32.mrf.mxu2 }
  0x8a   :  { %v266_v59 = vpop.f32.mrf.mxu3 }
  0x8b   :  { %795 = vpow2.f32 %v757_v57  ;;  %v267_v60 = vadd.f32 %v266_v59, %v150_v58  ;;  %v132_v61 = vpop.f32.mrf.mxu0 }
  0x8c   :  { %v248_v62 = vpop.f32.mrf.mxu1 }
  0x8d   :  { %v1036_v63 = vadd.f32 %v1029_v53, %v267_v60  ;;  %v249_v0 = vadd.f32 %v248_v62, %v132_v61 }
  0x8f   :  { %v765_v1 = vmul.f32 -1.442695, %v1036_v63  ;;  %v1040_v2 = vadd.f32 %v1029_v53, %v249_v0 }
  0x91   :  { %v796_v3 = vpop.eup %795  ;;  %797 = vpow2.f32 %v765_v1  ;;  %v758_v4 = vmul.f32 -1.442695, %v1040_v2  ;;  %v152_v5 = vpop.f32.mrf.mxu2 }
  0x92   :  { %v354_v6 = vadd.f32 1.0, %v796_v3  ;;  %v268_v7 = vpop.f32.mrf.mxu3 }
  0x93   :  { %799 = vpow2.f32 %v758_v4  ;;  %v269_v8 = vadd.f32 %v268_v7, %v152_v5  ;;  %v135_v9 = vpop.f32.mrf.mxu0 }
  0x94   :  { %801 = vrcp.f32 %v354_v6  ;;  %v251_v10 = vpop.f32.mrf.mxu1  ;;  %v379_v23 = vand.u32 2147483647, %v354_v6  ;;  %v381_v26 = vand.u32 2147483648, %v354_v6  ;;  %vm375_vm2 = vweird.f32 %v354_v6 }
  0x95   :  { %v1044_v11 = vadd.f32 %v1029_v53, %v269_v8  ;;  %v252_v12 = vadd.f32 %v251_v10, %v135_v9 }
  0x96   :  { %vm1061_vm4 = vcmp.eq.f32.partialorder %v379_v23, 8.507059e+37  ;;  %v382_v37 = vor.u32 1.1754944e-38, %v381_v26 }
  0x97   :  { %v798_v13 = vpop.eup %797  ;;  %v766_v14 = vmul.f32 -1.442695, %v1044_v11  ;;  %v1048_v15 = vadd.f32 %v1029_v53, %v252_v12 }
  0x98   :  { %v1050_v16 = vadd.f32 1.0, %v798_v13 }
  0x99   :  { %v800_v17 = vpop.eup %799  ;;  %803 = vpow2.f32 %v766_v14  ;;  %v759_v18 = vmul.f32 -1.442695, %v1048_v15  ;;  %v155_v19 = vpop.f32.mrf.mxu2 }
  0x9a   :  { %v802_v20 = vpop.eup %801  ;;  %805 = vrcp.f32 %v1050_v16  ;;  %v271_v21 = vpop.f32.mrf.mxu3  ;;  %v1054_v24 = vadd.f32 1.0, %v800_v17  ;;  %v499_v30 = vand.u32 2147483647, %v1050_v16  ;;  %v501_v38 = vand.u32 2147483648, %v1050_v16 }
  0x9b   :  { %v371_v22 = vmul.f32 %v802_v20, %v354_v6  ;;  %807 = vpow2.f32 %v759_v18  ;;  %v137_v25 = vpop.f32.mrf.mxu0  ;;  %v272_v27 = vadd.f32 %v271_v21, %v155_v19  ;;  %vm376_vm3 = vweird.f32 %v802_v20 }
  0x9c   :  { %v253_v28 = vpop.f32.mrf.mxu1  ;;  %809 = vrcp.f32 %v1054_v24  ;;  %vm495_vm5 = vweird.f32 %v1050_v16  ;;  %vm1071_vm6 = vcmp.eq.f32.partialorder %v499_v30, 8.507059e+37  ;;  %vm377_vm7 = vmor %vm375_vm2, %vm376_vm3  ;;  %v394_v46 = vand.u32 2147483647, %v1054_v24 }
  0x9d   :  { %v372_v29 = vsub.f32 1.0, %v371_v22  ;;  %v1059_v31 = vadd.f32 %v1029_v53, %v272_v27  ;;  %v254_v32 = vadd.f32 %v253_v28, %v137_v25  ;;  %v396_v47 = vand.u32 2147483648, %v1054_v24 }
  0x9e   :  { %v502_v58 = vor.u32 1.1754944e-38, %v501_v38  ;;  %vm390_vm9 = vweird.f32 %v1054_v24  ;;  %vm1090_vm10 = vcmp.eq.f32.partialorder %v394_v46, 8.507059e+37 }
  0x9f   :  { %v804_v33 = vpop.eup %803  ;;  %v373_v34 = vmul.f32 %v802_v20, %v372_v29  ;;  %v767_v40 = vmul.f32 -1.442695, %v1059_v31  ;;  %v1079_v48 = vadd.f32 %v1029_v53, %v254_v32  ;;  %v397_v4 = vor.u32 1.1754944e-38, %v396_v47 }
  0xa0   :  { %v806_v36 = vpop.eup %805  ;;  %v1066_v39 = vadd.f32 1.0, %v804_v33 }
  0xa1   :  { %v808_v41 = vpop.eup %807  ;;  %v374_v42 = vadd.f32 %v802_v20, %v373_v34  ;;  %v491_v43 = vmul.f32 %v806_v36, %v1050_v16  ;;  %v157_v45 = vpop.f32.mrf.mxu2  ;;  %vm496_vm8 = vweird.f32 %v806_v36  ;;  %v760_v6 = vmul.f32 -1.442695, %v1079_v48 }
  0xa2   :  { %811 = vrcp.f32 %v1066_v39  ;;  %v273_v49 = vpop.f32.mrf.mxu3  ;;  %v810_v50 = vpop.eup %809  ;;  %v1081_v54 = vadd.f32 1.0, %v808_v41  ;;  %v514_v0 = vand.u32 2147483647, %v1066_v39  ;;  %vm497_vm11 = vmor %vm495_vm5, %vm496_vm8  ;;  %vm510_vm13 = vweird.f32 %v1066_v39 }
  0xa3   :  { %v378_v51 = vsel %vm377_vm7, %v802_v20, %v374_v42  ;;  %v492_v52 = vsub.f32 1.0, %v491_v43  ;;  %813 = vpow2.f32 %v767_v40  ;;  %v140_v55 = vpop.f32.mrf.mxu0  ;;  %v386_v59 = vmul.f32 %v810_v50, %v1054_v24 }
  0xa4   :  { %v383_v57 = vsel %vm1061_vm4, %v382_v37, %v378_v51  ;;  %v256_v60 = vpop.f32.mrf.mxu1  ;;  %815 = vrcp.f32 %v1081_v54  ;;  %v274_v7 = vadd.f32 %v273_v49, %v157_v45  ;;  %vm391_vm12 = vweird.f32 %v810_v50 }
  0xa5   :  { %v610_v61 = vmul.f32 %v383_v57, %v1032_v56  ;;  %v493_v62 = vmul.f32 %v806_v36, %v492_v52  ;;  %v387_v1 = vsub.f32 1.0, %v386_v59  ;;  %v257_v8 = vadd.f32 %v256_v60, %v140_v55  ;;  %vm392_vm15 = vmor %vm390_vm9, %vm391_vm12 }
  0xa6   :  { %v516_v10 = vand.u32 2147483648, %v1066_v39  ;;  %vm1101_vm14 = vcmp.eq.f32.partialorder %v514_v0, 8.507059e+37  ;;  %817 = vpow2.f32 %v760_v6  ;;  %v1110_v21 = vadd.f32 %v1029_v53, %v274_v7 }
  0xa7   :  { %626 = vst [vmem:[#allocation2] sm:$0xff] %v610_v61  ;;  %v494_v5 = vadd.f32 %v806_v36, %v493_v62  ;;  %v388_v9 = vmul.f32 %v810_v50, %v387_v1  ;;  %v1117_v27 = vadd.f32 %v1029_v53, %v257_v8  ;;  %vm405_vm1 = vweird.f32 %v1081_v54 }
  0xa8   :  { %v812_v56 = vpop.eup %811  ;;  %v517_v32 = vor.u32 1.1754944e-38, %v516_v10  ;;  %v409_v37 = vand.u32 2147483647, %v1081_v54  ;;  %v768_v38 = vmul.f32 -1.442695, %v1110_v21  ;;  %v411_v42 = vand.u32 2147483648, %v1081_v54 }
  0xa9   :  { %v814_v12 = vpop.eup %813  ;;  %v498_v13 = vsel %vm497_vm11, %v806_v36, %v494_v5  ;;  %v506_v14 = vmul.f32 %v812_v56, %v1066_v39  ;;  %v160_v18 = vpop.f32.mrf.mxu2  ;;  %v389_v19 = vadd.f32 %v810_v50, %v388_v9  ;;  %vm511_vm0 = vweird.f32 %v812_v56 }
  0xaa   :  { %v503_v16 = vsel %vm1071_vm6, %v502_v58, %v498_v13  ;;  %v1107_v20 = vadd.f32 1.0, %v814_v12  ;;  %v276_v22 = vpop.f32.mrf.mxu3  ;;  %v816_v23 = vpop.eup %815  ;;  %v761_v43 = vmul.f32 -1.442695, %v1117_v27  ;;  %vm512_vm2 = vmor %vm510_vm13, %vm511_vm0  ;;  %v412_v58 = vor.u32 1.1754944e-38, %v411_v42 }
  0xab   :  { %v618_v25 = vmul.f32 %v503_v16, %v1036_v63  ;;  %v507_v26 = vsub.f32 1.0, %v506_v14  ;;  %v277_v28 = vadd.f32 %v276_v22, %v160_v18  ;;  %v142_v29 = vpop.f32.mrf.mxu0  ;;  %v393_v30 = vsel %vm392_vm15, %v810_v50, %v389_v19 }
  0xac   :  { %v401_v33 = vmul.f32 %v816_v23, %v1081_v54  ;;  %819 = vrcp.f32 %v1107_v20  ;;  %v258_v34 = vpop.f32.mrf.mxu1  ;;  %v398_v63 = vsel %vm1090_vm10, %v397_v4, %v393_v30  ;;  %v818_v40 = vpop.eup %817  ;;  %vm406_vm3 = vweird.f32 %v816_v23 }
  0xad   :  { %634 = vst [vmem:[#allocation2 + $0x40] sm:$0xff] %v618_v25  ;;  %v508_v35 = vmul.f32 %v812_v56, %v507_v26  ;;  %v611_v24 = vmul.f32 %v398_v63, %v1040_v2  ;;  %v1130_v44 = vadd.f32 %v1029_v53, %v277_v28  ;;  %v1134_v2 = vadd.f32 1.0, %v818_v40  ;;  %vm407_vm4 = vmor %vm405_vm1, %vm406_vm3 }
  0xae   :  { %v402_v36 = vsub.f32 1.0, %v401_v33  ;;  %821 = vpow2.f32 %v768_v38  ;;  %v259_v49 = vadd.f32 %v258_v34, %v142_v29  ;;  %vm410_vm5 = vcmp.eq.f32.partialorder %v409_v37, 8.507059e+37 }
  0xaf   :  { %v509_v41 = vadd.f32 %v812_v56, %v508_v35  ;;  %627 = vst [vmem:[#allocation2 + $0x8] sm:$0xff] %v611_v24  ;;  %823 = vpow2.f32 %v761_v43  ;;  %v769_v47 = vmul.f32 -1.442695, %v1130_v44  ;;  %v529_v54 = vand.u32 2147483647, %v1107_v20 }
  0xb0   :  { %v403_v45 = vmul.f32 %v816_v23, %v402_v36  ;;  %825 = vrcp.f32 %v1134_v2  ;;  %v1145_v61 = vadd.f32 %v1029_v53, %v259_v49  ;;  %v531_v5 = vand.u32 2147483648, %v1107_v20 }
  0xb1   :  { %v513_v46 = vsel %vm512_vm2, %v812_v56, %v509_v41  ;;  %v162_v55 = vpop.f32.mrf.mxu2  ;;  %827 = vpow2.f32 %v769_v47  ;;  %vm525_vm7 = vweird.f32 %v1107_v20  ;;  %v424_v16 = vand.u32 2147483647, %v1134_v2 }
  0xb2   :  { %v820_v50 = vpop.eup %819  ;;  %v518_v51 = vsel %vm1101_vm14, %v517_v32, %v513_v46  ;;  %v404_v52 = vadd.f32 %v816_v23, %v403_v45  ;;  %v278_v39 = vpop.f32.mrf.mxu3  ;;  %v762_v6 = vmul.f32 -1.442695, %v1145_v61  ;;  %v532_v18 = vor.u32 1.1754944e-38, %v531_v5 }
  0xb3   :  { %v619_v57 = vmul.f32 %v518_v51, %v1044_v11  ;;  %v521_v59 = vmul.f32 %v820_v50, %v1107_v20  ;;  %v145_v1 = vpop.f32.mrf.mxu0  ;;  %vm526_vm6 = vweird.f32 %v820_v50  ;;  %v279_v9 = vadd.f32 %v278_v39, %v162_v55 }
  0xb4   :  { %v408_v60 = vsel %vm407_vm4, %v816_v23, %v404_v52  ;;  %v261_v3 = vpop.f32.mrf.mxu1  ;;  %v822_v4 = vpop.eup %821  ;;  %829 = vpow2.f32 %v762_v6  ;;  %vm527_vm8 = vmor %vm525_vm7, %vm526_vm6  ;;  %v426_v19 = vand.u32 2147483648, %v1134_v2  ;;  %vm530_vm9 = vcmp.eq.f32.partialorder %v529_v54, 8.507059e+37 }
  0xb5   :  { %635 = vst [vmem:[#allocation2 + $0x48] sm:$0xff] %v619_v57  ;;  %v413_v62 = vsel %vm410_vm5, %v412_v58, %v408_v60  ;;  %v522_v0 = vsub.f32 1.0, %v521_v59  ;;  %v824_v7 = vpop.eup %823  ;;  %v1151_v56 = vadd.f32 1.0, %v822_v4  ;;  %v262_v13 = vadd.f32 %v261_v3, %v145_v1 }
  0xb6   :  { %v612_v11 = vmul.f32 %v413_v62, %v1048_v15  ;;  %v826_v10 = vpop.eup %825  ;;  %v1153_v12 = vadd.f32 1.0, %v824_v7  ;;  %v1162_v25 = vadd.f32 %v1029_v53, %v279_v9  ;;  %vm420_vm11 = vweird.f32 %v1134_v2 }
  0xb7   :  { %v523_v8 = vmul.f32 %v820_v50, %v522_v0  ;;  %v416_v15 = vmul.f32 %v826_v10, %v1134_v2  ;;  %831 = vrcp.f32 %v1151_v56  ;;  %v828_v17 = vpop.eup %827  ;;  %vm421_vm10 = vweird.f32 %v826_v10 }
  0xb8   :  { %628 = vst [vmem:[#allocation2 + $0x10] sm:$0xff] %v612_v11  ;;  %833 = vrcp.f32 %v1153_v12  ;;  %v544_v26 = vand.u32 2147483647, %v1151_v56  ;;  %v1166_v28 = vadd.f32 %v1029_v53, %v262_v13  ;;  %v546_v34 = vand.u32 2147483648, %v1151_v56  ;;  %vm422_vm15 = vmor %vm420_vm11, %vm421_vm10 }
  0xb9   :  { %v524_v14 = vadd.f32 %v820_v50, %v523_v8  ;;  %v417_v23 = vsub.f32 1.0, %v416_v15  ;;  %v165_v29 = vpop.f32.mrf.mxu2  ;;  %v1170_v63 = vadd.f32 1.0, %v828_v17  ;;  %vm1173_vm12 = vcmp.eq.f32.partialorder %v424_v16, 8.507059e+37 }
  0xba   :  { %v281_v30 = vpop.f32.mrf.mxu3  ;;  %v830_v35 = vpop.eup %829  ;;  %v427_v36 = vor.u32 1.1754944e-38, %v426_v19  ;;  %vm540_vm13 = vweird.f32 %v1151_v56  ;;  %vm435_vm14 = vweird.f32 %v1153_v12  ;;  %vm1183_vm0 = vcmp.eq.f32.partialorder %v544_v26, 8.507059e+37 }
  0xbb   :  { %v528_v22 = vsel %vm527_vm8, %v820_v50, %v524_v14  ;;  %v418_v33 = vmul.f32 %v826_v10, %v417_v23  ;;  %835 = vrcp.f32 %v1170_v63  ;;  %v1187_v43 = vadd.f32 1.0, %v830_v35  ;;  %v147_v39 = vpop.f32.mrf.mxu0 }
  0xbc   :  { %v533_v20 = vsel %vm530_vm9, %v532_v18, %v528_v22  ;;  %v770_v45 = vmul.f32 -1.442695, %v1162_v25  ;;  %v282_v2 = vadd.f32 %v281_v30, %v165_v29  ;;  %v547_v47 = vor.u32 1.1754944e-38, %v546_v34  ;;  %v263_v57 = vpop.f32.mrf.mxu1 }
  0xbd   :  { %v620_v32 = vmul.f32 %v533_v20, %v1059_v31  ;;  %v832_v37 = vpop.eup %831  ;;  %v419_v38 = vadd.f32 %v826_v10, %v418_v33  ;;  %v439_v31 = vand.u32 2147483647, %v1153_v12  ;;  %v763_v50 = vmul.f32 -1.442695, %v1166_v28 }
  0xbe   :  { %v834_v40 = vpop.eup %833  ;;  %v536_v41 = vmul.f32 %v832_v37, %v1151_v56  ;;  %v441_v55 = vand.u32 2147483648, %v1153_v12  ;;  %837 = vrcp.f32 %v1187_v43  ;;  %v561_v62 = vand.u32 2147483648, %v1170_v63 }
  0xbf   :  { %636 = vst [vmem:[#allocation2 + $0x50] sm:$0xff] %v620_v32  ;;  %v423_v46 = vsel %vm422_vm15, %v826_v10, %v419_v38  ;;  %v431_v49 = vmul.f32 %v834_v40, %v1153_v12  ;;  %vm1197_vm1 = vcmp.eq.f32.partialorder %v439_v31, 8.507059e+37  ;;  %vm541_vm2 = vweird.f32 %v832_v37 }
  0xc0   :  { %v428_v51 = vsel %vm1173_vm12, %v427_v36, %v423_v46  ;;  %v537_v52 = vsub.f32 1.0, %v536_v41  ;;  %839 = vpow2.f32 %v770_v45  ;;  %v1203_v1 = vadd.f32 %v1029_v53, %v282_v2  ;;  %vm542_vm5 = vmor %vm540_vm13, %vm541_vm2 }
  0xc1   :  { %v613_v58 = vmul.f32 %v428_v51, %v1079_v48  ;;  %v432_v59 = vsub.f32 1.0, %v431_v49  ;;  %v836_v3 = vpop.eup %835  ;;  %vm436_vm3 = vweird.f32 %v834_v40  ;;  %841 = vpow2.f32 %v763_v50  ;;  %v167_v6 = vpop.f32.mrf.mxu2 }
  0xc2   :  { %v538_v0 = vmul.f32 %v832_v37, %v537_v52  ;;  %v264_v11 = vadd.f32 %v263_v57, %v147_v39  ;;  %v442_v54 = vor.u32 1.1754944e-38, %v441_v55  ;;  %v551_v5 = vmul.f32 %v836_v3, %v1170_v63  ;;  %v283_v7 = vpop.f32.mrf.mxu3  ;;  %vm437_vm6 = vmor %vm435_vm14, %vm436_vm3 }
  0xc3   :  { %629 = vst [vmem:[#allocation2 + $0x18] sm:$0xff] %v613_v58  ;;  %v433_v4 = vmul.f32 %v834_v40, %v432_v59  ;;  %vm555_vm4 = vweird.f32 %v1170_v63  ;;  %v559_v9 = vand.u32 2147483647, %v1170_v63  ;;  %v562_v10 = vor.u32 1.1754944e-38, %v561_v62 }
  0xc4   :  { %v539_v48 = vadd.f32 %v832_v37, %v538_v0  ;;  %v771_v13 = vmul.f32 -1.442695, %v1203_v1  ;;  %v838_v14 = vpop.eup %837  ;;  %v552_v17 = vsub.f32 1.0, %v551_v5  ;;  %vm556_vm7 = vweird.f32 %v836_v3 }
  0xc5   :  { %v434_v8 = vadd.f32 %v834_v40, %v433_v4  ;;  %v1216_v18 = vadd.f32 %v1029_v53, %v264_v11  ;;  %v446_v19 = vmul.f32 %v838_v14, %v1187_v43  ;;  %v284_v22 = vadd.f32 %v283_v7, %v167_v6  ;;  %vm557_vm8 = vmor %vm555_vm4, %vm556_vm7 }
  0xc6   :  { %v543_v15 = vsel %vm542_vm5, %v832_v37, %v539_v48  ;;  %v840_v23 = vpop.eup %839  ;;  %v553_v12 = vmul.f32 %v836_v3, %v552_v17  ;;  %843 = vpow2.f32 %v771_v13  ;;  %v454_v33 = vand.u32 2147483647, %v1187_v43 }
  0xc7   :  { %v548_v56 = vsel %vm1183_vm0, %v547_v47, %v543_v15  ;;  %v438_v16 = vsel %vm437_vm6, %v834_v40, %v434_v8  ;;  %v842_v29 = vpop.eup %841  ;;  %v447_v32 = vsub.f32 1.0, %v446_v19  ;;  %v367_v34 = vadd.f32 1.0, %v840_v23 }
  0xc8   :  { %v621_v20 = vmul.f32 %v548_v56, %v1110_v21  ;;  %v443_v26 = vsel %vm1197_vm1, %v442_v54, %v438_v16  ;;  %v554_v35 = vadd.f32 %v836_v3, %v553_v12  ;;  %v456_v24 = vand.u32 2147483648, %v1187_v43 }
  0xc9   :  { %v614_v30 = vmul.f32 %v443_v26, %v1117_v27  ;;  %v360_v36 = vadd.f32 1.0, %v842_v29  ;;  %v764_v37 = vmul.f32 -1.442695, %v1216_v18  ;;  %v448_v21 = vmul.f32 %v838_v14, %v447_v32 }
  0xca   :  { %637 = vst [vmem:[#allocation2 + $0x58] sm:$0xff] %v621_v20  ;;  %vm451_vm9 = vweird.f32 %v838_v14  ;;  %845 = vrcp.f32 %v367_v34  ;;  %v1232_v27 = vadd.f32 %v1029_v53, %v284_v22  ;;  %v558_v38 = vsel %vm557_vm8, %v836_v3, %v554_v35 }
  0xcb   :  { %630 = vst [vmem:[#allocation2 + $0x20] sm:$0xff] %v614_v30  ;;  %vm560_vm10 = vcmp.eq.f32.partialorder %v559_v9, 8.507059e+37  ;;  %847 = vrcp.f32 %v360_v36  ;;  %v449_v40 = vadd.f32 %v838_v14, %v448_v21  ;;  %vm450_vm11 = vweird.f32 %v1187_v43 }
  0xcc   :  { %v563_v31 = vsel %vm560_vm10, %v562_v10, %v558_v38  ;;  %v844_v41 = vpop.eup %843  ;;  %vm452_vm12 = vmor %vm450_vm11, %vm451_vm9  ;;  %v457_v45 = vor.u32 1.1754944e-38, %v456_v24  ;;  %849 = vpow2.f32 %v764_v37  ;;  %vm455_vm13 = vcmp.eq.f32.partialorder %v454_v33, 8.507059e+37 }
  0xcd   :  { %v622_v42 = vmul.f32 %v563_v31, %v1130_v44  ;;  %v453_v63 = vsel %vm452_vm12, %v838_v14, %v449_v40  ;;  %v368_v2 = vadd.f32 1.0, %v844_v41  ;;  %v772_v46 = vmul.f32 -1.442695, %v1232_v27 }
  0xce   :  { %v458_v53 = vsel %vm455_vm13, %v457_v45, %v453_v63  ;;  %v574_v55 = vand.u32 2147483647, %v367_v34  ;;  %v576_v39 = vand.u32 2147483648, %v367_v34  ;;  %v469_v58 = vand.u32 2147483647, %v360_v36 }
  0xcf   :  { %638 = vst [vmem:[#allocation2 + $0x60] sm:$0xff] %v622_v42  ;;  %v615_v49 = vmul.f32 %v458_v53, %v1145_v61  ;;  %851 = vrcp.f32 %v368_v2  ;;  %v471_v62 = vand.u32 2147483648, %v360_v36  ;;  %vm465_vm15 = vweird.f32 %v360_v36 }
  0xd0   :  { %v846_v47 = vpop.eup %845  ;;  %853 = vpow2.f32 %v772_v46  ;;  %vm570_vm1 = vweird.f32 %v367_v34  ;;  %vm575_vm2 = vcmp.eq.f32.partialorder %v574_v55, 8.507059e+37  ;;  %v577_v48 = vor.u32 1.1754944e-38, %v576_v39 }
  0xd1   :  { %v848_v50 = vpop.eup %847  ;;  %v566_v51 = vmul.f32 %v846_v47, %v367_v34  ;;  %631 = vst [vmem:[#allocation2 + $0x28] sm:$0xff] %v615_v49  ;;  %vm571_vm14 = vweird.f32 %v846_v47  ;;  %vm470_vm4 = vcmp.eq.f32.partialorder %v469_v58, 8.507059e+37  ;;  %v472_v7 = vor.u32 1.1754944e-38, %v471_v62 }
  0xd2   :  { %v461_v43 = vmul.f32 %v848_v50, %v360_v36  ;;  %v850_v44 = vpop.eup %849  ;;  %vm466_vm0 = vweird.f32 %v848_v50  ;;  %vm572_vm3 = vmor %vm570_vm1, %vm571_vm14  ;;  %v589_v9 = vand.u32 2147483647, %v368_v2  ;;  %v591_v14 = vand.u32 2147483648, %v368_v2 }
  0xd3   :  { %v567_v52 = vsub.f32 1.0, %v566_v51  ;;  %v361_v59 = vadd.f32 1.0, %v850_v44  ;;  %vm467_vm5 = vmor %vm465_vm15, %vm466_vm0  ;;  %vm585_vm7 = vweird.f32 %v368_v2 }
  0xd4   :  { %v462_v57 = vsub.f32 1.0, %v461_v43  ;;  %v592_v20 = vor.u32 1.1754944e-38, %v591_v14  ;;  %vm590_vm9 = vcmp.eq.f32.partialorder %v589_v9, 8.507059e+37 }
  0xd5   :  { %v568_v60 = vmul.f32 %v846_v47, %v567_v52  ;;  %v852_v0 = vpop.eup %851  ;;  %855 = vrcp.f32 %v361_v59  ;;  %v484_v32 = vand.u32 2147483647, %v361_v59  ;;  %vm480_vm11 = vweird.f32 %v361_v59 }
  0xd6   :  { %v463_v3 = vmul.f32 %v848_v50, %v462_v57  ;;  %v854_v61 = vpop.eup %853  ;;  %v581_v11 = vmul.f32 %v852_v0, %v368_v2  ;;  %vm586_vm6 = vweird.f32 %v852_v0 }
  0xd7   :  { %v569_v4 = vadd.f32 %v846_v47, %v568_v60  ;;  %v369_v5 = vadd.f32 1.0, %v854_v61  ;;  %vm587_vm8 = vmor %vm585_vm7, %vm586_vm6  ;;  %vm485_vm13 = vcmp.eq.f32.partialorder %v484_v32, 8.507059e+37 }
  0xd8   :  { %v464_v54 = vadd.f32 %v848_v50, %v463_v3  ;;  %v582_v8 = vsub.f32 1.0, %v581_v11 }
  0xd9   :  { %v573_v6 = vsel %vm572_vm3, %v846_v47, %v569_v4  ;;  %857 = vrcp.f32 %v369_v5  ;;  %v606_v37 = vand.u32 2147483648, %v369_v5  ;;  %v604_v31 = vand.u32 2147483647, %v369_v5 }
  0xda   :  { %v578_v10 = vsel %vm575_vm2, %v577_v48, %v573_v6  ;;  %v468_v13 = vsel %vm467_vm5, %v848_v50, %v464_v54  ;;  %v583_v56 = vmul.f32 %v852_v0, %v582_v8  ;;  %vm600_vm15 = vweird.f32 %v369_v5 }
  0xdb   :  { %v623_v15 = vmul.f32 %v578_v10, %v1162_v25  ;;  %v473_v17 = vsel %vm470_vm4, %v472_v7, %v468_v13  ;;  %v856_v16 = vpop.eup %855  ;;  %v486_v25 = vand.u32 2147483648, %v361_v59  ;;  %vm605_vm1 = vcmp.eq.f32.partialorder %v604_v31, 8.507059e+37 }
  0xdc   :  { %v616_v19 = vmul.f32 %v473_v17, %v1166_v28  ;;  %v584_v22 = vadd.f32 %v852_v0, %v583_v56  ;;  %v476_v23 = vmul.f32 %v856_v16, %v361_v59  ;;  %vm481_vm10 = vweird.f32 %v856_v16 }
  0xdd   :  { %639 = vst [vmem:[#allocation2 + $0x68] sm:$0xff] %v623_v15  ;;  %vm482_vm12 = vmor %vm480_vm11, %vm481_vm10  ;;  %v487_v36 = vor.u32 1.1754944e-38, %v486_v25 }
  0xde   :  { %632 = vst [vmem:[#allocation2 + $0x30] sm:$0xff] %v616_v19  ;;  %v588_v26 = vsel %vm587_vm8, %v852_v0, %v584_v22  ;;  %v477_v12 = vsub.f32 1.0, %v476_v23 }
  0xdf   :  { %v858_v29 = vpop.eup %857  ;;  %v593_v30 = vsel %vm590_vm9, %v592_v20, %v588_v26 }
  0xe0   :  { %v624_v33 = vmul.f32 %v593_v30, %v1203_v1  ;;  %v478_v34 = vmul.f32 %v856_v16, %v477_v12  ;;  %v596_v35 = vmul.f32 %v858_v29, %v369_v5  ;;  %vm601_vm14 = vweird.f32 %v858_v29 }
  0xe1   :  { %vm602_vm0 = vmor %vm600_vm15, %vm601_vm14  ;;  %v607_v1 = vor.u32 1.1754944e-38, %v606_v37 }
  0xe2   :  { %640 = vst [vmem:[#allocation2 + $0x70] sm:$0xff] %v624_v33  ;;  %v479_v28 = vadd.f32 %v856_v16, %v478_v34  ;;  %v597_v24 = vsub.f32 1.0, %v596_v35 }
  0xe4   :  { %v483_v21 = vsel %vm482_vm12, %v856_v16, %v479_v28  ;;  %v598_v38 = vmul.f32 %v858_v29, %v597_v24 }
  0xe5   :  { %v488_v40 = vsel %vm485_vm13, %v487_v36, %v483_v21 }
  0xe6   :  { %v617_v41 = vmul.f32 %v488_v40, %v1216_v18  ;;  %v599_v42 = vadd.f32 %v858_v29, %v598_v38 }
  0xe8   :  { %633 = vst [vmem:[#allocation2 + $0x38] sm:$0xff] %v617_v41  ;;  %v603_v45 = vsel %vm602_vm0, %v858_v29, %v599_v42 }
  0xe9   :  { %v608_v63 = vsel %vm605_vm1, %v607_v1, %v603_v45 }
  0xea   :  { %v625_v2 = vmul.f32 %v608_v63, %v1232_v27 }
  0xec   :  { %641 = vst [vmem:[#allocation2 + $0x78] sm:$0xff] %v625_v2 }
  0xed   :  { %654 = dma.vmem_to_hbm [thread:$0]  %s647_s2, 2048, %s649_s27, [#allocation3], %s886_s28, %s886_s28, %s887_s29  }
  0xee   :  { %883 = dma.done.wait [#allocation3], 2048  }
  0xef   :  { %884 = vsyncadd [#allocation3], 4294965248 }
  0xf0   :  { %659 = vsyncpa [#allocation3], 1 }

</bundles_post_ra>
